<compile_context>
chip_gen: v5e
topology: v5e:2x2
jax: 0.10.0
libtpu: 0.0.40
codegen_flags: <defaults>
</compile_context>

<pallas_src>
import math

import jax
import jax.numpy as jnp
from jax.experimental import pallas as pl
from jax.experimental.pallas import tpu as pltpu


# ----------------------------- elementwise helpers ----------------------------

def _softplus(x):
    # Overflow-safe softplus: log(1+e^x) = max(x, 0) + log(1 + e^{-|x|}); exp arg <= 0.
    return jnp.maximum(x, 0.0) + jnp.log(1.0 + jnp.exp(-jnp.abs(x)))


def _mish(x):
    # Mish(x) = x * tanh(softplus(x))
    return x * jnp.tanh(_softplus(x))


def _gelu_exact(x):
    # nn.GELU() default (approximate='none'): 0.5*x*(1+erf(x/sqrt(2)))
    return 0.5 * x * (1.0 + jax.lax.erf(x * (1.0 / math.sqrt(2.0))))


def _round_up(n, m):
    return ((n + m - 1) // m) * m


# ------------------------------ parameter packing -----------------------------

def init_params(key, input_dim, hidden_dims, output_dim, time_dim):
    dims = [input_dim] + list(hidden_dims) + [output_dim]
    n_linear = len(dims) - 1
    keys = iter(jax.random.split(key, 4 + 4 * n_linear))

    def linear(din, dout, scale=0.05):
        w = scale * jax.random.normal(next(keys), (din, dout), jnp.float32)
        b = scale * jax.random.normal(next(keys), (1, dout), jnp.float32)
        return w, b

    time_w1, time_b1 = linear(time_dim, time_dim * 4)
    time_w2, time_b2 = linear(time_dim * 4, time_dim)
    aug = [linear(time_dim, dims[i]) for i in range(n_linear)]   # time_dim -> in_features_i
    mlp = [linear(dims[i], dims[i + 1]) for i in range(n_linear)]
    return {"time": (time_w1, time_b1, time_w2, time_b2), "aug": aug, "mlp": mlp}


def pack_params(params, time_dim):
    """Pack every parameter tensor into one lane-padded f32 slab (done once at init).

    Returns (slab, layout) where layout[name] = (row_offset, rows, cols).  Each tensor's
    row block is padded to a multiple of 8 sublanes so all in-kernel views are aligned.
    """
    tw1, tb1, tw2, tb2 = params["time"]
    aug_w = jnp.concatenate([w for w, _ in params["aug"]], axis=1)   # (td, Σ in_i)
    aug_b = jnp.concatenate([b for _, b in params["aug"]], axis=1)   # (1, Σ in_i)

    tensors = [("tw1", tw1), ("tb1", tb1), ("tw2", tw2), ("tb2", tb2),
               ("aug_w", aug_w), ("aug_b", aug_b)]
    for i, (w, b) in enumerate(params["mlp"]):
        tensors.append((f"w{i}", w))
        tensors.append((f"b{i}", b))

    width = _round_up(max(a.shape[1] for _, a in tensors), 128)     # lane-dense slab
    blocks, layout, off = [], {}, 0
    for name, a in tensors:
        r, c = a.shape
        rp = _round_up(r, 8)
        blocks.append(jnp.pad(a.astype(jnp.float32), ((0, rp - r), (0, width - c))))
        layout[name] = (off, r, c)
        off += rp
    slab = jnp.concatenate(blocks, axis=0)                          # (Σ rp, width)
    return slab, layout


# --------------------------------- kernel ------------------------------------

def _make_kernel(layout, dims, time_dim, tile_b, seq_len):
    """Fused kernel over a tile of `tile_b` batch rows (tile_b*seq_len tokens)."""
    num_linear = len(dims) - 1
    td = time_dim

    def kernel(emb_ref, x_ref, slab_ref, out_ref):
        f32 = jnp.float32

        def ld(name):
            off, r, c = layout[name]
            return slab_ref[pl.ds(off, r), pl.ds(0, c)]

        # ---- time-MLP tail, batched over all tile_b rows at once ----
        emb = emb_ref[...]                                                   # (tile_b, td)
        h = jnp.dot(emb, ld("tw1"), preferred_element_type=f32) + ld("tb1")
        h = _mish(h)
        t_embed = jnp.dot(h, ld("tw2"), preferred_element_type=f32) + ld("tb2")
        t_mish = _mish(t_embed)                                              # (tile_b, td)

        # ---- all augment projections in one MXU push: (tile_b, td) @ (td, Σ in_i) ----
        aug_all = jnp.dot(t_mish, ld("aug_w"), preferred_element_type=f32) + ld("aug_b")

        # ---- augmented MLP over the flattened token tile ----
        x = x_ref[...]                                                       # (tile_b*T, D)
        if x.dtype != f32:
            x = x.astype(f32)

        col = 0
        for li in range(num_linear):
            in_i, out_i = dims[li], dims[li + 1]
            w = ld(f"w{li}")
            b = ld(f"b{li}")
            aug_i = aug_all[:, col:col + in_i]
            col += in_i

            # Fold the augment add into a per-batch-row post-matmul bias:
            #   (x + aug) @ W + b == x @ W + (aug @ W + b)
            fold = jnp.dot(aug_i, w, preferred_element_type=f32) + b         # (tile_b, out_i)

            # TODO(synk): at >=128-wide layers on v6e/v7x cast x/w to bf16 for the dot
            # (keep preferred_element_type=f32); on v5e keep erf/tanh/exp math in f32.
            y = jnp.dot(x, w, preferred_element_type=f32)                    # (tile_b*T, out_i)
            # Leading-dim split keeps the lane dim untouched (no relayout copy); the fold
            # broadcasts over the token axis without materializing a (tile_b*T, out_i) copy.
            y = y.reshape(tile_b, seq_len, out_i) + fold[:, None, :]
            if li < num_linear - 1:                      # hidden act; output act = Identity
                y = _gelu_exact(y)
            x = y.reshape(tile_b * seq_len, out_i)

        out_ref[...] = x.astype(out_ref.dtype)

    return kernel


# --------------------------------- glue --------------------------------------

def sinusoidal_pos_emb(t, dim):
    """SinusoidalPosEmb from denoising_diffusion_pytorch (+ the .squeeze(dim=1))."""
    half_dim = dim // 2
    assert half_dim > 1, "time_dim must be >= 4 (half_dim - 1 divisor)"
    scale = math.log(10000.0) / (half_dim - 1)
    freqs = jnp.exp(jnp.arange(half_dim, dtype=jnp.float32) * -scale)   # (half_dim,)
    phase = t.reshape(-1, 1).astype(jnp.float32) * freqs[None, :]       # (B, half_dim)
    return jnp.concatenate([jnp.sin(phase), jnp.cos(phase)], axis=-1)   # (B, dim)


def _num_tensorcores_per_chip():
    # v7x has 2 TensorCores/chip; v5e/v6e have 1.  On 1-TC chips a "parallel" 2-step grid
    # is just a serial loop costing an extra ~0.35 us launch plus re-DMA of the slab.
    try:
        kind = jax.devices()[0].device_kind.lower()
    except Exception:
        return 1
    return 2 if "v7" in kind else 1


def _pick_num_tiles(batch, seq):
    if _num_tensorcores_per_chip() < 2:
        return 1
    tile_b = batch // 2
    # Each tile must keep a sublane-aligned batch block and enough rows (>=512) to
    # amortize per-step grid overhead; otherwise one fused step wins.
    if batch % 2 == 0 and tile_b % 8 == 0 and tile_b * seq >= 512:
        return 2
    return 1


def time_conditioned_mlp(x, t, slab, layout, dims, time_dim):
    B, T, D = x.shape
    assert D == dims[0]
    num_linear = len(dims) - 1
    out_dim = dims[-1]

    emb = sinusoidal_pos_emb(t, time_dim)      # (B, time_dim) -- tiny elementwise glue
    x2 = x.reshape(B * T, D)                   # tokens flattened batch-major

    num_tiles = _pick_num_tiles(B, T)          # 1 at these toy sizes / on 1-TC chips
    tile_b = B // num_tiles
    tile_rows = tile_b * T

    # Weight slab: whole array, constant index map.  With >1 tile the slab never changes,
    # so single-buffer it (halves its VMEM footprint, skips redundant prefetch bookkeeping).
    if num_tiles > 1:
        slab_spec = pl.BlockSpec(slab.shape, lambda i: (0, 0), pipeline_mode=pl.Buffered(1))
    else:
        slab_spec = pl.BlockSpec(slab.shape, lambda i: (0, 0))

    in_specs = [
        pl.BlockSpec((tile_b, time_dim), lambda i: (i, 0)),     # emb rows of this tile
        pl.BlockSpec((tile_rows, D), lambda i: (i, 0)),         # token rows of this tile
        slab_spec,                                              # all parameters, one DMA
    ]

    # Advisory cost estimate so XLA can schedule this tiny custom call against neighbors.
    tokens = B * T
    layer_macs = sum(dims[i] * dims[i + 1] for i in range(num_linear))
    flops = 2 * tokens * layer_macs                              # main MLP matmuls
    flops += 2 * B * (time_dim * 4 * time_dim) * 2               # time-MLP matmuls
    flops += 2 * B * time_dim * sum(dims[:-1])                   # fused augment projection
    flops += 2 * B * layer_macs                                  # per-layer fold matmuls
    transcendentals = tokens * sum(dims[1:-1]) + 3 * B * (4 * time_dim + time_dim)
    bytes_accessed = 4 * (tokens * D + B * time_dim + int(slab.size) + tokens * out_dim)

    # NOTE: at B*T >= 128 switch to a tokens-on-lanes layout for a lane-dense output store;
    # at 16 tokens the sublane->lane relayout would cost more than the masked store it saves.
    out = pl.pallas_call(
        _make_kernel(layout, dims, time_dim, tile_b, T),
        out_shape=jax.ShapeDtypeStruct((B * T, out_dim), x.dtype),
        grid=(num_tiles,),
        in_specs=in_specs,
        out_specs=pl.BlockSpec((tile_rows, out_dim), lambda i: (i, 0)),
        compiler_params=pltpu.CompilerParams(dimension_semantics=("parallel",)),
        cost_estimate=pl.CostEstimate(flops=flops, transcendentals=transcendentals,
                                      bytes_accessed=bytes_accessed),
    )(emb, x2, slab)

    return out.reshape(B, T, out_dim)


# ------------------------- pure-JAX reference (unfused) ------------------------

def reference_forward(x, t, params, time_dim):
    emb = sinusoidal_pos_emb(t, time_dim)
    tw1, tb1, tw2, tb2 = params["time"]
    t_embed = jnp.dot(_mish(jnp.dot(emb, tw1) + tb1), tw2) + tb2
    y = x
    n = len(params["mlp"])
    for i, ((wa, ba), (w, b)) in enumerate(zip(params["aug"], params["mlp"])):
        augment = jnp.dot(_mish(t_embed), wa) + ba          # (B, in_i)
        y = y + augment[:, None, :]
        y = jnp.dot(y, w) + b
        if i < n - 1:
            y = _gelu_exact(y)
    return y


# --------------------------------- main --------------------------------------

if __name__ == "__main__":
    B, T = 2, 8
    input_dim, hidden_dims, output_dim, time_dim = 16, (32, 32), 16, 16
    dims = (input_dim,) + tuple(hidden_dims) + (output_dim,)

    key = jax.random.PRNGKey(0)
    k_x, k_t, k_p = jax.random.split(key, 3)
    x = jax.random.normal(k_x, (B, T, input_dim), dtype=jnp.float32)
    t = jax.random.uniform(k_t, (B, 1), dtype=jnp.float32, minval=0.0, maxval=100.0)
    params = init_params(k_p, input_dim, hidden_dims, output_dim, time_dim)

    slab, layout = pack_params(params, time_dim)             # pack once at init
    out = time_conditioned_mlp(x, t, slab, layout, dims, time_dim)
    jax.block_until_ready(out)
    assert out.shape == (B, T, output_dim) and out.dtype == jnp.float32

    # The augment fold reassociates FP adds -> compare with a tolerance, not bitwise.
    ref = reference_forward(x, t, params, time_dim)
    max_err = float(jnp.max(jnp.abs(out - ref)))
    assert max_err < 1e-4, f"mismatch vs reference: {max_err}"

    print("KERNEL_OK")
</pallas_src>

<mosaic_0001>
module attributes {stable_mosaic.version = 11 : i64} {
  func.func @kernel(%arg0: i32, %arg1: memref<2x16xf32, #tpu.memory_space<vmem>>, %arg2: memref<16x16xf32, #tpu.memory_space<vmem>>, %arg3: memref<224x128xf32, #tpu.memory_space<vmem>>, %arg4: memref<16x16xf32, #tpu.memory_space<vmem>>) attributes {dimension_semantics = [#tpu.dimension_semantics<parallel>], iteration_bounds = array<i64: 1>, scalar_prefetch = 0 : i64, scratch_operands = 0 : i64, tpu.core_type = #tpu.core_type<tc>, window_params = [{transform_indices = @transform_0, window_bounds = array<i64: 2, 16>}, {transform_indices = @transform_1, window_bounds = array<i64: 16, 16>}, {pipeline_mode = #tpu.pipeline_mode<synchronous>, transform_indices = @transform_2, window_bounds = array<i64: 224, 128>}, {transform_indices = @transform_3, window_bounds = array<i64: 16, 16>}]} {
    %c0 = arith.constant 0 : index
    %c0_0 = arith.constant 0 : index
    %0 = vector.load %arg1[%c0, %c0_0] : memref<2x16xf32, #tpu.memory_space<vmem>>, vector<2x16xf32>
    %c0_1 = arith.constant 0 : index
    %c0_2 = arith.constant 0 : index
    %1 = vector.load %arg3[%c0_1, %c0_2] : memref<224x128xf32, #tpu.memory_space<vmem>>, vector<16x64xf32>
    %cst = arith.constant dense<0.000000e+00> : vector<2x64xf32>
    %2 = tpu.matmul %0, %1, %cst {dimension_numbers = #tpu.dot_dimension_numbers<[1], [0], [0], [1], [0, 0, 1, 1], [], []>} : vector<2x16xf32>, vector<16x64xf32>, vector<2x64xf32> -> vector<2x64xf32>
    %c16 = arith.constant 16 : index
    %c0_3 = arith.constant 0 : index
    %3 = vector.load %arg3[%c16, %c0_3] : memref<224x128xf32, #tpu.memory_space<vmem>>, vector<1x64xf32>
    %4 = vector.broadcast %3 : vector<1x64xf32> to vector<2x64xf32>
    %5 = arith.addf %2, %4 : vector<2x64xf32>
    %cst_4 = arith.constant 0.000000e+00 : f32
    %6 = vector.broadcast %cst_4 : f32 to vector<2x64xf32>
    %7 = arith.maximumf %5, %6 : vector<2x64xf32>
    %8 = math.absf %5 : vector<2x64xf32>
    %cst_5 = arith.constant 0.000000e+00 : f32
    %9 = vector.broadcast %cst_5 : f32 to vector<2x64xf32>
    %10 = arith.subf %9, %8 : vector<2x64xf32>
    %11 = math.exp %10 : vector<2x64xf32>
    %cst_6 = arith.constant 1.000000e+00 : f32
    %12 = vector.broadcast %cst_6 : f32 to vector<2x64xf32>
    %13 = arith.addf %12, %11 : vector<2x64xf32>
    %14 = math.log %13 : vector<2x64xf32>
    %15 = arith.addf %7, %14 : vector<2x64xf32>
    %16 = math.tanh %15 : vector<2x64xf32>
    %17 = arith.mulf %5, %16 : vector<2x64xf32>
    %c24 = arith.constant 24 : index
    %c0_7 = arith.constant 0 : index
    %18 = vector.load %arg3[%c24, %c0_7] : memref<224x128xf32, #tpu.memory_space<vmem>>, vector<64x16xf32>
    %cst_8 = arith.constant dense<0.000000e+00> : vector<2x16xf32>
    %19 = tpu.matmul %17, %18, %cst_8 {dimension_numbers = #tpu.dot_dimension_numbers<[1], [0], [0], [1], [0, 0, 1, 1], [], []>} : vector<2x64xf32>, vector<64x16xf32>, vector<2x16xf32> -> vector<2x16xf32>
    %c88 = arith.constant 88 : index
    %c0_9 = arith.constant 0 : index
    %20 = vector.load %arg3[%c88, %c0_9] : memref<224x128xf32, #tpu.memory_space<vmem>>, vector<1x16xf32>
    %21 = vector.broadcast %20 : vector<1x16xf32> to vector<2x16xf32>
    %22 = arith.addf %19, %21 : vector<2x16xf32>
    %cst_10 = arith.constant 0.000000e+00 : f32
    %23 = vector.broadcast %cst_10 : f32 to vector<2x16xf32>
    %24 = arith.maximumf %22, %23 : vector<2x16xf32>
    %25 = math.absf %22 : vector<2x16xf32>
    %cst_11 = arith.constant 0.000000e+00 : f32
    %26 = vector.broadcast %cst_11 : f32 to vector<2x16xf32>
    %27 = arith.subf %26, %25 : vector<2x16xf32>
    %28 = math.exp %27 : vector<2x16xf32>
    %cst_12 = arith.constant 1.000000e+00 : f32
    %29 = vector.broadcast %cst_12 : f32 to vector<2x16xf32>
    %30 = arith.addf %29, %28 : vector<2x16xf32>
    %31 = math.log %30 : vector<2x16xf32>
    %32 = arith.addf %24, %31 : vector<2x16xf32>
    %33 = math.tanh %32 : vector<2x16xf32>
    %34 = arith.mulf %22, %33 : vector<2x16xf32>
    %c96 = arith.constant 96 : index
    %c0_13 = arith.constant 0 : index
    %35 = vector.load %arg3[%c96, %c0_13] : memref<224x128xf32, #tpu.memory_space<vmem>>, vector<16x80xf32>
    %cst_14 = arith.constant dense<0.000000e+00> : vector<2x80xf32>
    %36 = tpu.matmul %34, %35, %cst_14 {dimension_numbers = #tpu.dot_dimension_numbers<[1], [0], [0], [1], [0, 0, 1, 1], [], []>} : vector<2x16xf32>, vector<16x80xf32>, vector<2x80xf32> -> vector<2x80xf32>
    %c112 = arith.constant 112 : index
    %c0_15 = arith.constant 0 : index
    %37 = vector.load %arg3[%c112, %c0_15] : memref<224x128xf32, #tpu.memory_space<vmem>>, vector<1x80xf32>
    %38 = vector.broadcast %37 : vector<1x80xf32> to vector<2x80xf32>
    %39 = arith.addf %36, %38 : vector<2x80xf32>
    %c0_16 = arith.constant 0 : index
    %c0_17 = arith.constant 0 : index
    %40 = vector.load %arg2[%c0_16, %c0_17] : memref<16x16xf32, #tpu.memory_space<vmem>>, vector<16x16xf32>
    %c120 = arith.constant 120 : index
    %c0_18 = arith.constant 0 : index
    %41 = vector.load %arg3[%c120, %c0_18] : memref<224x128xf32, #tpu.memory_space<vmem>>, vector<16x32xf32>
    %c136 = arith.constant 136 : index
    %c0_19 = arith.constant 0 : index
    %42 = vector.load %arg3[%c136, %c0_19] : memref<224x128xf32, #tpu.memory_space<vmem>>, vector<1x32xf32>
    %43 = vector.extract_strided_slice %39 {offsets = [0, 0], sizes = [2, 16], strides = [1, 1]} : vector<2x80xf32> to vector<2x16xf32>
    %cst_20 = arith.constant dense<0.000000e+00> : vector<2x32xf32>
    %44 = tpu.matmul %43, %41, %cst_20 {dimension_numbers = #tpu.dot_dimension_numbers<[1], [0], [0], [1], [0, 0, 1, 1], [], []>} : vector<2x16xf32>, vector<16x32xf32>, vector<2x32xf32> -> vector<2x32xf32>
    %45 = vector.broadcast %42 : vector<1x32xf32> to vector<2x32xf32>
    %46 = arith.addf %44, %45 : vector<2x32xf32>
    %cst_21 = arith.constant dense<0.000000e+00> : vector<16x32xf32>
    %47 = tpu.matmul %40, %41, %cst_21 {dimension_numbers = #tpu.dot_dimension_numbers<[1], [0], [0], [1], [0, 0, 1, 1], [], []>} : vector<16x16xf32>, vector<16x32xf32>, vector<16x32xf32> -> vector<16x32xf32>
    %48 = vector.shape_cast %47 : vector<16x32xf32> to vector<2x8x32xf32>
    %49 = vector.shape_cast %46 : vector<2x32xf32> to vector<2x1x32xf32>
    %50 = vector.broadcast %49 : vector<2x1x32xf32> to vector<2x8x32xf32>
    %51 = arith.addf %48, %50 : vector<2x8x32xf32>
    %cst_22 = arith.constant 5.000000e-01 : f32
    %52 = vector.broadcast %cst_22 : f32 to vector<2x8x32xf32>
    %53 = arith.mulf %52, %51 : vector<2x8x32xf32>
    %cst_23 = arith.constant 0.707106769 : f32
    %54 = vector.broadcast %cst_23 : f32 to vector<2x8x32xf32>
    %55 = arith.mulf %51, %54 : vector<2x8x32xf32>
    %56 = math.erf %55 : vector<2x8x32xf32>
    %cst_24 = arith.constant 1.000000e+00 : f32
    %57 = vector.broadcast %cst_24 : f32 to vector<2x8x32xf32>
    %58 = arith.addf %57, %56 : vector<2x8x32xf32>
    %59 = arith.mulf %53, %58 : vector<2x8x32xf32>
    %60 = vector.shape_cast %59 : vector<2x8x32xf32> to vector<16x32xf32>
    %c144 = arith.constant 144 : index
    %c0_25 = arith.constant 0 : index
    %61 = vector.load %arg3[%c144, %c0_25] : memref<224x128xf32, #tpu.memory_space<vmem>>, vector<32x32xf32>
    %c176 = arith.constant 176 : index
    %c0_26 = arith.constant 0 : index
    %62 = vector.load %arg3[%c176, %c0_26] : memref<224x128xf32, #tpu.memory_space<vmem>>, vector<1x32xf32>
    %63 = vector.extract_strided_slice %39 {offsets = [0, 16], sizes = [2, 32], strides = [1, 1]} : vector<2x80xf32> to vector<2x32xf32>
    %cst_27 = arith.constant dense<0.000000e+00> : vector<2x32xf32>
    %64 = tpu.matmul %63, %61, %cst_27 {dimension_numbers = #tpu.dot_dimension_numbers<[1], [0], [0], [1], [0, 0, 1, 1], [], []>} : vector<2x32xf32>, vector<32x32xf32>, vector<2x32xf32> -> vector<2x32xf32>
    %65 = vector.broadcast %62 : vector<1x32xf32> to vector<2x32xf32>
    %66 = arith.addf %64, %65 : vector<2x32xf32>
    %cst_28 = arith.constant dense<0.000000e+00> : vector<16x32xf32>
    %67 = tpu.matmul %60, %61, %cst_28 {dimension_numbers = #tpu.dot_dimension_numbers<[1], [0], [0], [1], [0, 0, 1, 1], [], []>} : vector<16x32xf32>, vector<32x32xf32>, vector<16x32xf32> -> vector<16x32xf32>
    %68 = vector.shape_cast %67 : vector<16x32xf32> to vector<2x8x32xf32>
    %69 = vector.shape_cast %66 : vector<2x32xf32> to vector<2x1x32xf32>
    %70 = vector.broadcast %69 : vector<2x1x32xf32> to vector<2x8x32xf32>
    %71 = arith.addf %68, %70 : vector<2x8x32xf32>
    %cst_29 = arith.constant 5.000000e-01 : f32
    %72 = vector.broadcast %cst_29 : f32 to vector<2x8x32xf32>
    %73 = arith.mulf %72, %71 : vector<2x8x32xf32>
    %cst_30 = arith.constant 0.707106769 : f32
    %74 = vector.broadcast %cst_30 : f32 to vector<2x8x32xf32>
    %75 = arith.mulf %71, %74 : vector<2x8x32xf32>
    %76 = math.erf %75 : vector<2x8x32xf32>
    %cst_31 = arith.constant 1.000000e+00 : f32
    %77 = vector.broadcast %cst_31 : f32 to vector<2x8x32xf32>
    %78 = arith.addf %77, %76 : vector<2x8x32xf32>
    %79 = arith.mulf %73, %78 : vector<2x8x32xf32>
    %80 = vector.shape_cast %79 : vector<2x8x32xf32> to vector<16x32xf32>
    %c184 = arith.constant 184 : index
    %c0_32 = arith.constant 0 : index
    %81 = vector.load %arg3[%c184, %c0_32] : memref<224x128xf32, #tpu.memory_space<vmem>>, vector<32x16xf32>
    %c216 = arith.constant 216 : index
    %c0_33 = arith.constant 0 : index
    %82 = vector.load %arg3[%c216, %c0_33] : memref<224x128xf32, #tpu.memory_space<vmem>>, vector<1x16xf32>
    %83 = vector.extract_strided_slice %39 {offsets = [0, 48], sizes = [2, 32], strides = [1, 1]} : vector<2x80xf32> to vector<2x32xf32>
    %cst_34 = arith.constant dense<0.000000e+00> : vector<2x16xf32>
    %84 = tpu.matmul %83, %81, %cst_34 {dimension_numbers = #tpu.dot_dimension_numbers<[1], [0], [0], [1], [0, 0, 1, 1], [], []>} : vector<2x32xf32>, vector<32x16xf32>, vector<2x16xf32> -> vector<2x16xf32>
    %85 = vector.broadcast %82 : vector<1x16xf32> to vector<2x16xf32>
    %86 = arith.addf %84, %85 : vector<2x16xf32>
    %cst_35 = arith.constant dense<0.000000e+00> : vector<16x16xf32>
    %87 = tpu.matmul %80, %81, %cst_35 {dimension_numbers = #tpu.dot_dimension_numbers<[1], [0], [0], [1], [0, 0, 1, 1], [], []>} : vector<16x32xf32>, vector<32x16xf32>, vector<16x16xf32> -> vector<16x16xf32>
    %88 = vector.shape_cast %87 : vector<16x16xf32> to vector<2x8x16xf32>
    %89 = vector.shape_cast %86 : vector<2x16xf32> to vector<2x1x16xf32>
    %90 = vector.broadcast %89 : vector<2x1x16xf32> to vector<2x8x16xf32>
    %91 = arith.addf %88, %90 : vector<2x8x16xf32>
    %92 = vector.shape_cast %91 : vector<2x8x16xf32> to vector<16x16xf32>
    %c0_36 = arith.constant 0 : index
    %c0_37 = arith.constant 0 : index
    %93 = vector.load %arg4[%c0_36, %c0_37] : memref<16x16xf32, #tpu.memory_space<vmem>>, vector<16x16xf32>
    tpu.vector_store %arg4[%c0_36, %c0_37], %92 {strides = array<i32>} : memref<16x16xf32, #tpu.memory_space<vmem>>, vector<16x16xf32>,
    return
  }
  func.func @transform_0(%arg0: i32) -> (i32, i32) {
    %c0_i32 = arith.constant 0 : i32
    %c0_i32_0 = arith.constant 0 : i32
    return %arg0, %c0_i32 : i32, i32
  }
  func.func @transform_1(%arg0: i32) -> (i32, i32) {
    %c0_i32 = arith.constant 0 : i32
    %c0_i32_0 = arith.constant 0 : i32
    return %arg0, %c0_i32 : i32, i32
  }
  func.func @transform_2(%arg0: i32) -> (i32, i32) {
    %c0_i32 = arith.constant 0 : i32
    %c0_i32_0 = arith.constant 0 : i32
    %c0_i32_1 = arith.constant 0 : i32
    return %c0_i32, %c0_i32_0 : i32, i32
  }
  func.func @transform_3(%arg0: i32) -> (i32, i32) {
    %c0_i32 = arith.constant 0 : i32
    %c0_i32_0 = arith.constant 0 : i32
    return %arg0, %c0_i32 : i32, i32
  }
}

</mosaic_0001>

<bundles_post_ra>
// kernel: tpu_custom_call.1
= control target key start
LH: loop header
LB: loop body
LE: loop exit
PB: predicated region body
PF: predicated region fallthrough
CT: control target
= control target key end

     0   :  { %8 = vsyncpa [#allocation3], 0  ;;  %s820_s0 = inlined_call_operand.hbm [shape: f32[2,16], index: 0, kind: input, shape index: {}]   ;;  %s821_s1 = inlined_call_operand.hbm [shape: f32[16,16], index: 1, kind: input, shape index: {}]   ;;  %s822_s2 = inlined_call_operand.hbm [shape: f32[224,128], index: 2, kind: input, shape index: {}]   ;;  %s823_s3 = inlined_call_operand.hbm [shape: f32[16,16], index: 3, kind: output, shape index: {}]  }
   0x1   :  { %9 = vsyncpa [#allocation6], 0  ;;  %s26_s14 = sshll.u32 %s821_s1, 4  ;;  %s27_s14 = int_to_ptr.hbm [resolvable:$true] %s26_s14 }
   0x2   :  { %10 = vsyncpa [#allocation4], 0  ;;  %s727_s15 = smov [#allocation5]   ;;  %s16_s19 = sshll.u32 %s820_s0, 4  ;;  %s17_s19 = int_to_ptr.hbm [resolvable:$true] %s16_s19 }
   0x3   :  { %s28_s16 = sshll.u32 %s727_s15, 4  ;;  %s728_s20 = smov 128   ;;  %s29_s16 = int_to_ptr.vmem [resolvable:$true] %s28_s16 }
   0x4   :  { %s729_s21 = smov 8   ;;  %s730_s22 = smov [#allocation2]  }
   0x5   :  { %34 = dma.hbm_to_vmem [thread:$0]  %s27_s14, 256, %s29_s16, [#allocation6], %s728_s20, %s728_s20, %s729_s21  }
   0x6   :  { %s18_s23 = sshll.u32 %s730_s22, 4  ;;  %s39_s25 = sshll.u32 %s822_s2, 4  ;;  %s19_s23 = int_to_ptr.vmem [resolvable:$true] %s18_s23  ;;  %s40_s25 = int_to_ptr.hbm [resolvable:$true] %s39_s25 }
   0x7   :  { %21 = dma.hbm_to_vmem [thread:$0]  %s17_s19, 32, %s19_s23, [#allocation3]  }
   0x8   :  { %s731_s26 = smov [#allocation7]  }
   0x9   :  { %s41_s27 = sshll.u32 %s731_s26, 4  ;;  %s42_s27 = int_to_ptr.vmem [resolvable:$true] %s41_s27 }
   0xa   :  { %47 = dma.hbm_to_vmem [thread:$0]  %s40_s25, 3584, %s42_s27, [#allocation6], %s728_s20, %s728_s20, %s729_s21  }
   0xb   :  { %721 = dma.done.wait [#allocation3], 32  }
   0xc   :  { %722 = vsyncadd [#allocation3], 4294967264 }
   0xd   :  { %723 = dma.done.wait [#allocation6], 3840  }
   0xe   :  { %724 = vsyncadd [#allocation6], 4294963456  ;;  %v62_v0 = vld [vmem:[#allocation7 + $0x8] sm:$0xff]  ;;  %v61_v1 = vld [vmem:[#allocation7] sm:$0xff]  ;;  %vm65_vm0 = vcmask 130048   ;;  %vm110_vm1 = vcmask 523264  }
   0xf   :  { %83 = vmatpush.msra.mxu0 %v62_v0  ;;  %v60_v2 = vld [vmem:[#allocation2] sm:$0x3]  ;;  %v107_v3 = vld [vmem:[#allocation7 + $0x50] sm:$0xff]  ;;  %v105_v5 = vld [vmem:[#allocation7 + $0x40] sm:$0xff]  ;;  %s732_s0 = smov 112   ;;  %s733_s2 = smov 80  }
  0x10   :  { %122 = vmatpush.msra.mxu1 %v107_v3  ;;  %v106_v4 = vld [vmem:[#allocation7 + $0x48] sm:$0xff]  ;;  %v104_v6 = vld [vmem:[#allocation7 + $0x38] sm:$0xff]  ;;  %v599_v7 = vld [vmem:[#allocation7 + $0x10] ss:$0 sm:$0xff]  ;;  %vm334_vm2 = vcmask 261120   ;;  %s734_s28 = smov [#allocation8]  }
  0x11   :  { %84 = vmatpush.msra.mxu0 %v61_v1  ;;  %v103_v8 = vld [vmem:[#allocation7 + $0x30] sm:$0xff]  ;;  %v102_v9 = vld [vmem:[#allocation7 + $0x28] sm:$0xff]  ;;  %v101_v11 = vld [vmem:[#allocation7 + $0x20] sm:$0xff]  ;;  %s555_s29 = sshll.u32 %s734_s28, 4  ;;  %s557_s5 = sshll.u32 %s823_s3, 4  ;;  %s556_s29 = int_to_ptr.vmem [resolvable:$true] %s555_s29  ;;  %s558_s5 = int_to_ptr.hbm [resolvable:$true] %s557_s5 }
  0x12   :  { %571 = vmatmul.msk.f32.vlgmr.msra.gmra.mxu0 %vm65_vm0, %v60_v2  ;;  %123 = vmatpush.msra.mxu1 %v106_v4  ;;  %v100_v13 = vld [vmem:[#allocation7 + $0x18] sm:$0xff]  ;;  %v146_v26 = vld [vmem:[#allocation7 + $0x68] sm:$0xff]  ;;  %v145_v27 = vld [vmem:[#allocation7 + $0x60] sm:$0xff] }
  0x13   :  { %v600_v25 = vld [vmem:[#allocation7 + $0x58] ss:$0 sm:$0xff]  ;;  %166 = vmatpush.msra.mxu2 %v146_v26  ;;  %v175_v41 = vld [vmem:[#allocation7 + $0x80] sm:$0xff]  ;;  %v172_v43 = vld [vmem:[#allocation5] sm:$0xff] }
  0x14   :  { %124 = vmatpush.msra.mxu1 %v105_v5  ;;  %195 = vmatpush.msra.mxu3 %v175_v41  ;;  %v174_v42 = vld [vmem:[#allocation7 + $0x78] sm:$0xff]  ;;  %v329_v45 = vld [vmem:[#allocation7 + $0xa8] sm:$0xff]  ;;  %v328_v46 = vld [vmem:[#allocation7 + $0xa0] sm:$0xff] }
  0x15   :  { %167 = vmatpush.msra.mxu2 %v145_v27  ;;  %221 = vmatpush.msrb.mxu0 %v175_v41  ;;  %v173_v44 = vld [vmem:[#allocation5 + $0x8] sm:$0xff]  ;;  %v326_v48 = vld [vmem:[#allocation7 + $0x90] sm:$0xff]  ;;  %v484_v53 = vld [vmem:[#allocation7 + $0xc8] sm:$0xff] }
  0x16   :  { %125 = vmatpush.msra.mxu1 %v104_v6  ;;  %196 = vmatpush.msra.mxu3 %v174_v42  ;;  %v327_v47 = vld [vmem:[#allocation7 + $0x98] sm:$0xff]  ;;  %v601_v49 = vld [vmem:[#allocation7 + $0x70] ss:$0 sm:$0xff]  ;;  %v483_v54 = vld [vmem:[#allocation7 + $0xc0] sm:$0xff] }
  0x17   :  { %222 = vmatpush.msrb.mxu0 %v174_v42  ;;  %349 = vmatpush.msrb.mxu2 %v329_v45  ;;  %v485_v52 = vld [vmem:[#allocation7 + $0xd0] sm:$0xff]  ;;  %v482_v55 = vld [vmem:[#allocation7 + $0xb8] sm:$0xff]  ;;  %v602_v59 = vld [vmem:[#allocation7 + $0x88] ss:$0 sm:$0xff] }
  0x18   :  { %126 = vmatpush.msra.mxu1 %v103_v8  ;;  %375 = vmatpush.msrb.mxu3 %v329_v45 }
  0x19   :  { %350 = vmatpush.msrb.mxu2 %v328_v46  ;;  %530 = vmatpush.msra.mxu0 %v485_v52 }
  0x1a   :  { %127 = vmatpush.msra.mxu1 %v102_v9  ;;  %575 = vmatmul.msk.f32.vlgmr.msrb.gmra.mxu0 %vm65_vm0, %v172_v43 }
  0x1b   :  { %376 = vmatpush.msrb.mxu3 %v328_v46  ;;  %351 = vmatpush.msrb.mxu2 %v327_v47 }
  0x1c   :  { %128 = vmatpush.msra.mxu1 %v101_v11  ;;  %531 = vmatpush.msra.mxu0 %v484_v53 }
  0x1d   :  { %377 = vmatpush.msrb.mxu3 %v327_v47  ;;  %352 = vmatpush.msrb.mxu2 %v326_v48 }
  0x1e   :  { %129 = vmatpush.msra.mxu1 %v100_v13  ;;  %532 = vmatpush.msra.mxu0 %v483_v54 }
  0x1f   :  { %378 = vmatpush.msrb.mxu3 %v326_v48 }
  0x20   :  { %587 = vmatpush.msrb.mxu1 %v485_v52  ;;  %533 = vmatpush.msra.mxu0 %v482_v55 }
  0x22   :  { %576 = vmatmul.msk.f32.gmra.mxu0 %vm65_vm0, %v173_v44  ;;  %588 = vmatpush.msrb.mxu1 %v484_v53 }
  0x24   :  { %589 = vmatpush.msrb.mxu1 %v483_v54 }
  0x26   :  { %590 = vmatpush.msrb.mxu1 %v482_v55 }
  0x8f   :  { %v86_v10 = vpop.f32.mrf.mxu0 }
  0x90   :  { %v87_v12 = vadd.f32 %v599_v7, %v86_v10 }
  0x92   :  { %v90_v14 = vand.u32 2147483647, %v87_v12  ;;  %v89_v20 = vmax.f32 %v87_v12, 0.0 }
  0x94   :  { %v91_v15 = vsub.f32 0.0, %v90_v14 }
  0x96   :  { %v92_v16 = vmul.f32 1.442695, %v91_v15 }
  0x97   :  { %v224_v58 = vpop.f32.mrf.mxu0 }
  0x98   :  { %605 = vpow2.f32 %v92_v16 }
  0x9e   :  { %v606_v17 = vpop.eup %605 }
  0x9f   :  { %v94_v18 = vadd.f32 1.0, %v606_v17  ;;  %v227_v0 = vpop.f32.mrf.mxu0 }
  0xa1   :  { %607 = vlog2.f32 %v94_v18 }
  0xa7   :  { %v608_v19 = vpop.eup %607 }
  0xa8   :  { %v96_v21 = vmul.f32 0.6931472, %v608_v19 }
  0xaa   :  { %v97_v22 = vadd.f32 %v96_v21, %v89_v20 }
  0xac   :  { %609 = vtanh.f32 %v97_v22 }
  0xb2   :  { %v610_v23 = vpop.eup %609 }
  0xb3   :  { %v99_v24 = vmul.f32 %v610_v23, %v87_v12 }
  0xb5   :  { %572 = vmatmul.msk.f32.vlgmr.msra.gmra.mxu1 %vm110_vm1, %v99_v24 }
 0x132   :  { %v131_v28 = vpop.f32.mrf.mxu1 }
 0x133   :  { %v132_v29 = vadd.f32 %v600_v25, %v131_v28 }
 0x135   :  { %v135_v30 = vand.u32 2147483647, %v132_v29  ;;  %v134_v36 = vmax.f32 %v132_v29, 0.0 }
 0x137   :  { %v136_v31 = vsub.f32 0.0, %v135_v30 }
 0x139   :  { %v137_v32 = vmul.f32 1.442695, %v136_v31 }
 0x13b   :  { %611 = vpow2.f32 %v137_v32 }
 0x141   :  { %v612_v33 = vpop.eup %611 }
 0x142   :  { %v139_v34 = vadd.f32 1.0, %v612_v33 }
 0x144   :  { %613 = vlog2.f32 %v139_v34 }
 0x14a   :  { %v614_v35 = vpop.eup %613 }
 0x14b   :  { %v141_v37 = vmul.f32 0.6931472, %v614_v35 }
 0x14d   :  { %v142_v38 = vadd.f32 %v141_v37, %v134_v36 }
 0x14f   :  { %615 = vtanh.f32 %v142_v38 }
 0x155   :  { %v616_v39 = vpop.eup %615 }
 0x156   :  { %v144_v40 = vmul.f32 %v616_v39, %v132_v29 }
 0x158   :  { %573 = vmatmul.msk.f32.vlgmr.msra.gmra.mxu2 %vm65_vm0, %v144_v40 }
 0x159   :  { %504 = vmatpush.msra.mxu2 %v485_v52 }
 0x15b   :  { %505 = vmatpush.msra.mxu2 %v484_v53 }
 0x15d   :  { %506 = vmatpush.msra.mxu2 %v483_v54 }
 0x15f   :  { %507 = vmatpush.msra.mxu2 %v482_v55 }
 0x1db   :  { %v169_v50 = vpop.f32.mrf.mxu2 }
 0x1dc   :  { %v170_v51 = vadd.f32 %v601_v49, %v169_v50 }
 0x1de   :  { %332 = vrot.lane.b32.xlu0 %v170_v51, %s732_s0  ;;  %574 = vmatmul.msk.f32.vlgmr.msra.gmra.mxu3 %vm65_vm0, %v170_v51 }
 0x1e6   :  { %488 = vrot.lane.b32.xlu0 %v170_v51, %s733_s2 }
 0x250   :  { %v333_v56 = vpop.permute.xlu0 %332 }
 0x251   :  { %579 = vmatmul.msk.f32.vlgmr.msrb.gmra.mxu2 %vm334_vm2, %v333_v56 }
 0x258   :  { %v489_v57 = vpop.permute.xlu0 %488 }
 0x259   :  { %584 = vmatmul.msk.f32.vlgmr.msra.gmra.mxu2 %vm334_vm2, %v489_v57 }
 0x261   :  { %v198_v60 = vpop.f32.mrf.mxu3 }
 0x262   :  { %v199_v61 = vadd.f32 %v602_v59, %v198_v60 }
 0x264   :  { %v231_v62 = vrot.slane %v199_v61, 1  ;;  %v232_v63 = vperm.slane %v199_v61, 0 }
 0x266   :  { %v777_v1 = vadd.f32 %v232_v63, %v224_v58  ;;  %v233_v2 = vperm.slane %v231_v62, 0 }
 0x268   :  { %v780_v3 = vmul.f32 0.70710677, %v777_v1  ;;  %v782_v4 = vadd.f32 %v233_v2, %v227_v0 }
 0x26a   :  { %v242_v5 = vmul.f32 %v780_v3, %v780_v3  ;;  %v787_v6 = vmul.f32 0.70710677, %v782_v4 }
 0x26c   :  { %v243_v7 = vmin.f32 %v242_v5, 16.0  ;;  %v282_v8 = vmul.f32 %v787_v6, %v787_v6 }
 0x26e   :  { %v244_v9 = vmul.f32 2.1237322e-06, %v243_v7  ;;  %v283_v10 = vmin.f32 %v282_v8, 16.0  ;;  %v255_v11 = vmul.f32 3.8918573e-05, %v243_v7 }
 0x270   :  { %v245_v12 = vadd.f32 0.00028619796, %v244_v9  ;;  %v284_v13 = vmul.f32 2.1237322e-06, %v283_v10  ;;  %v295_v14 = vmul.f32 3.8918573e-05, %v283_v10 }
 0x271   :  { %v256_v15 = vadd.f32 0.001143296, %v255_v11 }
 0x272   :  { %v246_v16 = vmul.f32 %v245_v12, %v243_v7  ;;  %v285_v17 = vadd.f32 0.00028619796, %v284_v13  ;;  %v296_v18 = vadd.f32 0.001143296, %v295_v14 }
 0x273   :  { %v257_v19 = vmul.f32 %v256_v15, %v243_v7  ;;  %v238_v15 = vmul.f32 0.5, %v777_v1 }
 0x274   :  { %v286_v20 = vmul.f32 %v285_v17, %v283_v10  ;;  %v297_v21 = vmul.f32 %v296_v18, %v283_v10  ;;  %v247_v22 = vadd.f32 0.0036580483, %v246_v16 }
 0x275   :  { %v258_v23 = vadd.f32 0.014752088, %v257_v19  ;;  %v239_v19 = vmul.f32 0.5, %v782_v4 }
 0x276   :  { %v298_v24 = vadd.f32 0.014752088, %v297_v21  ;;  %v287_v26 = vadd.f32 0.0036580483, %v286_v20  ;;  %v248_v28 = vmul.f32 %v247_v22, %v243_v7  ;;  %v603_v21 = vld [vmem:[#allocation7 + $0xb0] ss:$0 sm:$0xff] }
 0x277   :  { %v259_v25 = vmul.f32 %v258_v23, %v243_v7 }
 0x278   :  { %v299_v27 = vmul.f32 %v298_v24, %v283_v10  ;;  %v288_v32 = vmul.f32 %v287_v26, %v283_v10  ;;  %v249_v34 = vadd.f32 0.05243302, %v248_v28 }
 0x279   :  { %v260_v29 = vadd.f32 0.112945676, %v259_v25 }
 0x27a   :  { %v300_v30 = vadd.f32 0.112945676, %v299_v27  ;;  %v289_v38 = vadd.f32 0.05243302, %v288_v32  ;;  %v250_v40 = vmul.f32 %v249_v34, %v243_v7 }
 0x27b   :  { %v261_v31 = vmul.f32 %v260_v29, %v243_v7 }
 0x27c   :  { %v301_v33 = vmul.f32 %v300_v30, %v283_v10  ;;  %v290_v43 = vmul.f32 %v289_v38, %v283_v10  ;;  %v251_v44 = vadd.f32 0.18741608, %v250_v40 }
 0x27d   :  { %v262_v35 = vadd.f32 0.4994258, %v261_v31 }
 0x27e   :  { %v302_v36 = vadd.f32 0.4994258, %v301_v33  ;;  %v291_v45 = vadd.f32 0.18741608, %v290_v43  ;;  %v252_v47 = vmul.f32 %v251_v44, %v243_v7 }
 0x27f   :  { %v263_v37 = vmul.f32 %v262_v35, %v243_v7 }
 0x280   :  { %v303_v39 = vmul.f32 %v302_v36, %v283_v10  ;;  %v292_v51 = vmul.f32 %v291_v45, %v283_v10  ;;  %v253_v53 = vadd.f32 1.1283791, %v252_v47 }
 0x281   :  { %v264_v41 = vadd.f32 1.0, %v263_v37 }
 0x282   :  { %v304_v42 = vadd.f32 1.0, %v303_v39  ;;  %v293_v61 = vadd.f32 1.1283791, %v292_v51  ;;  %v254_v2 = vmul.f32 %v253_v53, %v780_v3 }
 0x283   :  { %617 = vrcp.f32 %v264_v41  ;;  %v276_v55 = vand.u32 2147483648, %v264_v41  ;;  %v274_v58 = vand.u32 2147483647, %v264_v41  ;;  %vm270_vm5 = vweird.f32 %v264_v41 }
 0x284   :  { %619 = vrcp.f32 %v304_v42  ;;  %v316_v56 = vand.u32 2147483648, %v304_v42  ;;  %v314_v60 = vand.u32 2147483647, %v304_v42  ;;  %vm310_vm6 = vweird.f32 %v304_v42 }
 0x285   :  { %v277_v0 = vor.u32 1.1754944e-38, %v276_v55  ;;  %vm275_vm9 = vcmp.eq.f32.partialorder %v274_v58, 8.507059e+37  ;;  %v294_v10 = vmul.f32 %v293_v61, %v787_v6 }
 0x286   :  { %v317_v5 = vor.u32 1.1754944e-38, %v316_v56  ;;  %vm315_vm10 = vcmp.eq.f32.partialorder %v314_v60, 8.507059e+37 }
 0x289   :  { %v618_v46 = vpop.eup %617 }
 0x28a   :  { %v620_v48 = vpop.eup %619  ;;  %v266_v49 = vmul.f32 %v618_v46, %v264_v41  ;;  %vm271_vm3 = vweird.f32 %v618_v46 }
 0x28b   :  { %v306_v50 = vmul.f32 %v620_v48, %v304_v42  ;;  %vm311_vm4 = vweird.f32 %v620_v48  ;;  %vm272_vm7 = vmor %vm270_vm5, %vm271_vm3 }
 0x28c   :  { %v267_v52 = vsub.f32 1.0, %v266_v49  ;;  %vm312_vm8 = vmor %vm310_vm6, %vm311_vm4 }
 0x28d   :  { %v307_v54 = vsub.f32 1.0, %v306_v50 }
 0x28e   :  { %v268_v57 = vmul.f32 %v618_v46, %v267_v52 }
 0x28f   :  { %v308_v59 = vmul.f32 %v620_v48, %v307_v54 }
 0x290   :  { %v269_v62 = vadd.f32 %v618_v46, %v268_v57 }
 0x291   :  { %v309_v63 = vadd.f32 %v620_v48, %v308_v59 }
 0x292   :  { %v273_v7 = vsel %vm272_vm7, %v618_v46, %v269_v62 }
 0x293   :  { %v313_v8 = vsel %vm312_vm8, %v620_v48, %v309_v63  ;;  %v278_v9 = vsel %vm275_vm9, %v277_v0, %v273_v7 }
 0x294   :  { %v318_v11 = vsel %vm315_vm10, %v317_v5, %v313_v8  ;;  %v279_v12 = vmul.f32 %v278_v9, %v254_v2 }
 0x295   :  { %v319_v13 = vmul.f32 %v318_v11, %v294_v10 }
 0x296   :  { %v577_v14 = vclamps-f32 %v279_v12, 1.0 }
 0x297   :  { %v578_v18 = vclamps-f32 %v319_v13, 1.0 }
 0x298   :  { %v322_v16 = vadd.f32 1.0, %v577_v14 }
 0x299   :  { %v323_v3 = vadd.f32 1.0, %v578_v18 }
 0x29a   :  { %v324_v17 = vmul.f32 %v322_v16, %v238_v15 }
 0x29b   :  { %v325_v20 = vmul.f32 %v323_v3, %v239_v19 }
 0x29c   :  { %580 = vmatmul.msk.f32.vlgmr.msrb.gmra.mxu3 %vm334_vm2, %v324_v17 }
 0x2a4   :  { %581 = vmatmul.msk.f32.gmra.mxu3 %vm334_vm2, %v325_v20 }
 0x2d4   :  { %v354_v22 = vpop.f32.mrf.mxu2 }
 0x2d5   :  { %v355_v6 = vadd.f32 %v603_v21, %v354_v22 }
 0x2d7   :  { %v388_v23 = vperm.slane %v355_v6, 0  ;;  %v387_v26 = vrot.slane %v355_v6, 1 }
 0x2d9   :  { %v389_v29 = vperm.slane %v387_v26, 0 }
 0x31f   :  { %v380_v24 = vpop.f32.mrf.mxu3 }
 0x320   :  { %v797_v25 = vadd.f32 %v388_v23, %v380_v24 }
 0x322   :  { %v396_v1 = vmul.f32 0.70710677, %v797_v25 }
 0x324   :  { %v398_v27 = vmul.f32 %v396_v1, %v396_v1 }
 0x326   :  { %v399_v28 = vmin.f32 %v398_v27, 16.0 }
 0x327   :  { %v383_v30 = vpop.f32.mrf.mxu3 }
 0x328   :  { %v400_v31 = vmul.f32 2.1237322e-06, %v399_v28  ;;  %v411_v32 = vmul.f32 3.8918573e-05, %v399_v28  ;;  %v800_v4 = vadd.f32 %v389_v29, %v383_v30 }
 0x32a   :  { %v401_v33 = vadd.f32 0.00028619796, %v400_v31  ;;  %v412_v34 = vadd.f32 0.001143296, %v411_v32  ;;  %v803_v35 = vmul.f32 0.70710677, %v800_v4 }
 0x32b   :  { %v394_v32 = vmul.f32 0.5, %v797_v25  ;;  %v604_v25 = vld [vmem:[#allocation7 + $0xd8] ss:$0 sm:$0xff] }
 0x32c   :  { %v402_v36 = vmul.f32 %v401_v33, %v399_v28  ;;  %v413_v37 = vmul.f32 %v412_v34, %v399_v28  ;;  %v438_v38 = vmul.f32 %v803_v35, %v803_v35 }
 0x32e   :  { %v414_v39 = vadd.f32 0.014752088, %v413_v37  ;;  %v403_v40 = vadd.f32 0.0036580483, %v402_v36  ;;  %v439_v41 = vmin.f32 %v438_v38, 16.0 }
 0x330   :  { %v415_v42 = vmul.f32 %v414_v39, %v399_v28  ;;  %v440_v43 = vmul.f32 2.1237322e-06, %v439_v41  ;;  %v451_v44 = vmul.f32 3.8918573e-05, %v439_v41  ;;  %v404_v46 = vmul.f32 %v403_v40, %v399_v28 }
 0x332   :  { %v416_v45 = vadd.f32 0.112945676, %v415_v42  ;;  %v441_v47 = vadd.f32 0.00028619796, %v440_v43  ;;  %v452_v48 = vadd.f32 0.001143296, %v451_v44 }
 0x333   :  { %v405_v53 = vadd.f32 0.05243302, %v404_v46  ;;  %v395_v42 = vmul.f32 0.5, %v800_v4 }
 0x334   :  { %v417_v49 = vmul.f32 %v416_v45, %v399_v28  ;;  %v442_v50 = vmul.f32 %v441_v47, %v439_v41  ;;  %v453_v51 = vmul.f32 %v452_v48, %v439_v41  ;;  %v509_v45 = vpop.f32.mrf.mxu2 }
 0x335   :  { %v406_v59 = vmul.f32 %v405_v53, %v399_v28  ;;  %v510_v46 = vadd.f32 %v604_v25, %v509_v45 }
 0x336   :  { %v418_v52 = vadd.f32 0.4994258, %v417_v49  ;;  %v454_v54 = vadd.f32 0.014752088, %v453_v51  ;;  %v443_v56 = vadd.f32 0.0036580483, %v442_v50 }
 0x337   :  { %v407_v63 = vadd.f32 0.18741608, %v406_v59  ;;  %v543_v47 = vperm.slane %v510_v46, 0 }
 0x338   :  { %v419_v55 = vmul.f32 %v418_v52, %v399_v28  ;;  %v455_v57 = vmul.f32 %v454_v54, %v439_v41  ;;  %v444_v61 = vmul.f32 %v443_v56, %v439_v41 }
 0x339   :  { %v408_v8 = vmul.f32 %v407_v63, %v399_v28 }
 0x33a   :  { %v420_v58 = vadd.f32 1.0, %v419_v55  ;;  %v456_v60 = vadd.f32 0.112945676, %v455_v57  ;;  %v445_v2 = vadd.f32 0.05243302, %v444_v61 }
 0x33b   :  { %v409_v14 = vadd.f32 1.1283791, %v408_v8 }
 0x33c   :  { %621 = vrcp.f32 %v420_v58  ;;  %v457_v62 = vmul.f32 %v456_v60, %v439_v41  ;;  %v446_v11 = vmul.f32 %v445_v2, %v439_v41  ;;  %v432_v13 = vand.u32 2147483648, %v420_v58 }
 0x33d   :  { %v430_v16 = vand.u32 2147483647, %v420_v58  ;;  %vm426_vm12 = vweird.f32 %v420_v58  ;;  %v410_v20 = vmul.f32 %v409_v14, %v396_v1 }
 0x33e   :  { %v458_v0 = vadd.f32 0.4994258, %v457_v62  ;;  %v447_v17 = vadd.f32 0.18741608, %v446_v11  ;;  %v433_v3 = vor.u32 1.1754944e-38, %v432_v13 }
 0x33f   :  { %vm431_vm14 = vcmp.eq.f32.partialorder %v430_v16, 8.507059e+37 }
 0x340   :  { %v459_v5 = vmul.f32 %v458_v0, %v439_v41  ;;  %v448_v6 = vmul.f32 %v447_v17, %v439_v41 }
 0x342   :  { %v622_v7 = vpop.eup %621  ;;  %v460_v10 = vadd.f32 1.0, %v459_v5  ;;  %v449_v29 = vadd.f32 1.1283791, %v448_v6 }
 0x343   :  { %v422_v9 = vmul.f32 %v622_v7, %v420_v58  ;;  %vm427_vm11 = vweird.f32 %v622_v7 }
 0x344   :  { %623 = vrcp.f32 %v460_v10  ;;  %vm428_vm13 = vmor %vm426_vm12, %vm427_vm11  ;;  %v472_v28 = vand.u32 2147483648, %v460_v10  ;;  %v470_v31 = vand.u32 2147483647, %v460_v10  ;;  %vm466_vm1 = vweird.f32 %v460_v10 }
 0x345   :  { %v423_v12 = vsub.f32 1.0, %v422_v9  ;;  %v450_v37 = vmul.f32 %v449_v29, %v803_v35  ;;  %v542_v35 = vrot.slane %v510_v46, 1 }
 0x346   :  { %v473_v1 = vor.u32 1.1754944e-38, %v472_v28  ;;  %vm471_vm4 = vcmp.eq.f32.partialorder %v470_v31, 8.507059e+37 }
 0x347   :  { %v424_v15 = vmul.f32 %v622_v7, %v423_v12  ;;  %v544_v4 = vperm.slane %v542_v35, 0 }
 0x349   :  { %v425_v18 = vadd.f32 %v622_v7, %v424_v15 }
 0x34a   :  { %v624_v19 = vpop.eup %623 }
 0x34b   :  { %v429_v21 = vsel %vm428_vm13, %v622_v7, %v425_v18  ;;  %v462_v23 = vmul.f32 %v624_v19, %v460_v10  ;;  %vm467_vm15 = vweird.f32 %v624_v19 }
 0x34c   :  { %v434_v22 = vsel %vm431_vm14, %v433_v3, %v429_v21  ;;  %vm468_vm3 = vmor %vm466_vm1, %vm467_vm15 }
 0x34d   :  { %v435_v24 = vmul.f32 %v434_v22, %v410_v20  ;;  %v463_v26 = vsub.f32 1.0, %v462_v23 }
 0x34f   :  { %v582_v27 = vclamps-f32 %v435_v24, 1.0  ;;  %v464_v30 = vmul.f32 %v624_v19, %v463_v26 }
 0x351   :  { %v478_v33 = vadd.f32 1.0, %v582_v27  ;;  %v465_v34 = vadd.f32 %v624_v19, %v464_v30 }
 0x353   :  { %v480_v36 = vmul.f32 %v478_v33, %v394_v32  ;;  %v469_v38 = vsel %vm468_vm3, %v624_v19, %v465_v34 }
 0x354   :  { %v474_v39 = vsel %vm471_vm4, %v473_v1, %v469_v38 }
 0x355   :  { %585 = vmatmul.msk.f32.vlgmr.msra.gmra.mxu0 %vm334_vm2, %v480_v36  ;;  %v475_v40 = vmul.f32 %v474_v39, %v450_v37 }
 0x357   :  { %v583_v41 = vclamps-f32 %v475_v40, 1.0 }
 0x359   :  { %v479_v43 = vadd.f32 1.0, %v583_v41 }
 0x35b   :  { %v481_v44 = vmul.f32 %v479_v43, %v395_v42 }
 0x35d   :  { %586 = vmatmul.msk.f32.vlgmr.msrb.gmra.mxu1 %vm334_vm2, %v481_v44 }
 0x3d2   :  { %v535_v48 = vpop.f32.mrf.mxu0 }
 0x3d3   :  { %v547_v49 = vadd.f32 %v543_v47, %v535_v48 }
 0x3d5   :  { %549 = vst.msk [vmem:[#allocation8] sm:$0xff] %vm65_vm0, %v547_v49 }
 0x3da   :  { %v538_v50 = vpop.f32.mrf.mxu1 }
 0x3db   :  { %v548_v51 = vadd.f32 %v544_v4, %v538_v50 }
 0x3dd   :  { %550 = vst.msk [vmem:[#allocation8 + $0x8] sm:$0xff] %vm65_vm0, %v548_v51 }
 0x3de   :  { %563 = dma.vmem_to_hbm [thread:$0]  %s556_s29, 256, %s558_s5, [#allocation4], %s728_s20, %s728_s20, %s729_s21  }
 0x3df   :  { %725 = dma.done.wait [#allocation4], 256  }
 0x3e0   :  { %726 = vsyncadd [#allocation4], 4294967040 }
 0x3e1   :  { %568 = vsyncpa [#allocation3], 1 }
 0x3e2   :  { %569 = vsyncpa [#allocation6], 1 }
 0x3e3   :  { %570 = vsyncpa [#allocation4], 1 }

</bundles_post_ra>
